<compile_context>
chip_gen: v7x
topology: tpu7x:2x2x1
jax: 0.10.0
libtpu: 0.0.40
codegen_flags: <defaults>
</compile_context>

<pallas_src>
import jax
import jax.numpy as jnp
from jax.experimental import pallas as pl
from jax.experimental.pallas import tpu as pltpu


def _round_up(n, m):
    return (n + m - 1) // m * m


def _linear_kernel(x_ref, w_ref, o_ref):
    # x_ref: (tile_b, Dp)  activation tile (lane-dense in D)
    # w_ref: (1, Dp)       lane-dense weight row, resident across grid steps
    # o_ref: (1, tile_b)   lane-dense output chunk
    # Contract the last (lane) dim of both operands: (1,Dp)·(tile_b,Dp)^T -> (1,tile_b)
    o_ref[...] = jax.lax.dot_general(
        w_ref[...],
        x_ref[...],
        dimension_numbers=(((1,), (1,)), ((), ())),
        preferred_element_type=jnp.float32,
    ).astype(o_ref.dtype)


def my_linear(x, weight, *, tile_b=None, compute_dtype=None):
    """Pallas equivalent of nn.Linear(input_size, 1, bias=False).

    x:      (B, D) activations
    weight: (1, D) PyTorch-layout weight (out_features=1, in_features=D)
    returns (B, 1)
    """
    B, D = x.shape
    assert weight.shape == (1, D), f"expected weight (1, {D}), got {weight.shape}"
    out_dtype = x.dtype

    # Optional narrow-dtype input path (v6e/v7x: halves HBM bytes; f32 accumulation).
    if compute_dtype is not None:
        x = x.astype(compute_dtype)
        weight = weight.astype(compute_dtype)
    itemsize = jnp.dtype(x.dtype).itemsize

    # Lane-dense D: zero-pad to a multiple of 128 (zeros do not change the dot).
    Dp = _round_up(D, 128)
    if Dp != D:
        x = jnp.pad(x, ((0, 0), (0, Dp - D)))
        weight = jnp.pad(weight, ((0, 0), (0, Dp - D)))

    # Batch tile: lane-dense multiple of 128, sized so the double-buffered x tile
    # stays around <=16 MiB (fits v7x's 64 MiB physical / 32 MiB scoped VMEM with
    # headroom; also fine on v5e/v6e).
    if tile_b is None:
        per_buffer_budget = 8 * 1024 * 1024
        tile_b = (per_buffer_budget // (Dp * itemsize)) // 128 * 128
        tile_b = max(128, min(2048, tile_b))
    # Small batches: collapse to a single full block (multiple of 8 is enough then).
    if _round_up(B, 8) <= tile_b:
        tile_b = _round_up(B, 8)

    Bp = _round_up(B, tile_b)
    num_tiles = Bp // tile_b
    assert tile_b % 8 == 0, "tile_b must be a multiple of 8"
    assert num_tiles == 1 or tile_b % 128 == 0, (
        "multi-tile runs require a lane-dense tile_b (multiple of 128)"
    )

    # Pad batch so the grid divides evenly; padded rows are zeros and sliced off.
    if Bp != B:
        x = jnp.pad(x, ((0, Bp - B), (0, 0)))

    cost = pl.CostEstimate(
        flops=2 * B * D,
        transcendentals=0,
        bytes_accessed=(Bp * Dp + Dp) * itemsize
        + Bp * jnp.dtype(out_dtype).itemsize,
    )

    out_row = pl.pallas_call(
        _linear_kernel,
        out_shape=jax.ShapeDtypeStruct((1, Bp), out_dtype),
        grid_spec=pltpu.PrefetchScalarGridSpec(
            num_scalar_prefetch=0,
            grid=(num_tiles,),
            in_specs=[
                pl.BlockSpec((tile_b, Dp), lambda i: (i, 0)),   # x: streamed tiles
                pl.BlockSpec((1, Dp), lambda i: (0, 0)),        # w: resident row
            ],
            out_specs=pl.BlockSpec((1, tile_b), lambda i: (0, i)),  # lane-dense out
        ),
        compiler_params=pltpu.CompilerParams(
            dimension_semantics=("parallel",),     # megacore-shard batch tiles
            vmem_limit_bytes=32 * 1024 * 1024,     # >= v5e's 16 MiB default
        ),
        cost_estimate=cost,
    )(x, weight)

    return out_row[0, :B].reshape(B, 1)


if __name__ == "__main__":
    key = jax.random.PRNGKey(0)
    k_x, k_w, k_x2, k_w2 = jax.random.split(key, 4)

    # --- Primary demo shape (matches the module's tiny config) -----------------
    batch, input_size = 8, 32
    bound = 1.0 / jnp.sqrt(jnp.float32(input_size))
    weight = jax.random.uniform(
        k_w, (1, input_size), dtype=jnp.float32, minval=-bound, maxval=bound
    )
    x = jax.random.normal(k_x, (batch, input_size), dtype=jnp.float32)

    out = jax.block_until_ready(my_linear(x, weight))
    ref = x @ weight.T
    assert out.shape == (batch, 1)
    assert jnp.allclose(out, ref, atol=1e-5, rtol=1e-5)

    # --- Ragged / multi-tile path: exercises D-padding, B-padding, grid > 1 ----
    B2, D2 = 300, 200
    bound2 = 1.0 / jnp.sqrt(jnp.float32(D2))
    w2 = jax.random.uniform(k_w2, (1, D2), dtype=jnp.float32,
                            minval=-bound2, maxval=bound2)
    x2 = jax.random.normal(k_x2, (B2, D2), dtype=jnp.float32)

    out2 = jax.block_until_ready(my_linear(x2, w2, tile_b=128))
    ref2 = x2 @ w2.T
    assert out2.shape == (B2, 1)
    assert jnp.allclose(out2, ref2, atol=1e-4, rtol=1e-4)

    # --- bf16 input path (HBM-traffic halving on v6e/v7x), f32 accumulation ----
    out2_bf16 = jax.block_until_ready(
        my_linear(x2, w2, tile_b=128, compute_dtype=jnp.bfloat16)
    )
    assert out2_bf16.shape == (B2, 1)
    assert jnp.allclose(out2_bf16, ref2, atol=5e-2, rtol=5e-2)

    print("KERNEL_OK")
</pallas_src>

<mosaic_0001>
module attributes {stable_mosaic.version = 11 : i64} {
  func.func @_linear_kernel(%arg0: i32, %arg1: memref<8x128xf32, #tpu.memory_space<vmem>>, %arg2: memref<1x128xf32, #tpu.memory_space<vmem>>, %arg3: memref<1x8xf32, #tpu.memory_space<vmem>>) attributes {dimension_semantics = [#tpu.dimension_semantics<parallel>], iteration_bounds = array<i64: 1>, scalar_prefetch = 0 : i64, scratch_operands = 0 : i64, tpu.core_type = #tpu.core_type<tc>, window_params = [{transform_indices = @transform_0, window_bounds = array<i64: 8, 128>}, {pipeline_mode = #tpu.pipeline_mode<synchronous>, transform_indices = @transform_1, window_bounds = array<i64: 1, 128>}, {transform_indices = @transform_2, window_bounds = array<i64: 1, 8>}]} {
    %c0 = arith.constant 0 : index
    %c0_0 = arith.constant 0 : index
    %0 = vector.load %arg2[%c0, %c0_0] : memref<1x128xf32, #tpu.memory_space<vmem>>, vector<1x128xf32>
    %c0_1 = arith.constant 0 : index
    %c0_2 = arith.constant 0 : index
    %1 = vector.load %arg1[%c0_1, %c0_2] : memref<8x128xf32, #tpu.memory_space<vmem>>, vector<8x128xf32>
    %cst = arith.constant dense<0.000000e+00> : vector<1x8xf32>
    %2 = tpu.matmul %0, %1, %cst {dimension_numbers = #tpu.dot_dimension_numbers<[1], [1], [0], [0], [0, 0, 1, 0], [], []>} : vector<1x128xf32>, vector<8x128xf32>, vector<1x8xf32> -> vector<1x8xf32>
    %c0_3 = arith.constant 0 : index
    %c0_4 = arith.constant 0 : index
    %3 = vector.load %arg3[%c0_3, %c0_4] : memref<1x8xf32, #tpu.memory_space<vmem>>, vector<1x8xf32>
    tpu.vector_store %arg3[%c0_3, %c0_4], %2 {strides = array<i32>} : memref<1x8xf32, #tpu.memory_space<vmem>>, vector<1x8xf32>,
    return
  }
  func.func @transform_0(%arg0: i32) -> (i32, i32) {
    %c0_i32 = arith.constant 0 : i32
    %c0_i32_0 = arith.constant 0 : i32
    return %arg0, %c0_i32 : i32, i32
  }
  func.func @transform_1(%arg0: i32) -> (i32, i32) {
    %c0_i32 = arith.constant 0 : i32
    %c0_i32_0 = arith.constant 0 : i32
    %c0_i32_1 = arith.constant 0 : i32
    return %c0_i32, %c0_i32_0 : i32, i32
  }
  func.func @transform_2(%arg0: i32) -> (i32, i32) {
    %c0_i32 = arith.constant 0 : i32
    %c0_i32_0 = arith.constant 0 : i32
    return %c0_i32, %arg0 : i32, i32
  }
}

</mosaic_0001>

<bundles_post_ra>
// kernel: tpu_custom_call.1
= control target key start
LH: loop header
LB: loop body
LE: loop exit
PB: predicated region body
PF: predicated region fallthrough
CT: control target
= control target key end

     0   :  { %7 = vsyncpa [#allocation3], 0  ;;  %s218_s0 = inlined_call_operand.hbm [shape: f32[8,128], index: 0, kind: input, shape index: {}]   ;;  %s219_s1 = inlined_call_operand.vmem [shape: f32[1,128], index: 1, kind: input, shape index: {}]   ;;  %s220_s2 = inlined_call_operand.hbm [shape: f32[1,8], index: 2, kind: output, shape index: {}]  }
   0x1   :  { %8 = vsyncpa [#allocation4], 0  ;;  %s172_s9 = smov [#allocation2]   ;;  %s124_s13 = scalar_lea.hbm %s218_s0, 128 }
   0x2   :  { %s15_s10 = sshll.u32 %s172_s9, 4  ;;  %p125_p0 = scmp.ne.s32.totalorder %s218_s0, %s124_s13  ;;  %s16_s10 = int_to_ptr.vmem [resolvable:$true] %s15_s10 }
   0x3   :  { %p128_p1 = scmp.lt.u32.totalorder %s124_s13, %s218_s0 }
   0x5   :  { %p130_p2 = pnand %p128_p1, %p125_p0 }
   0x7   :  { %133 = shalt.err (!%p130_p2)
}
   0x8   :  { %s134_s18 = scalar_lea.vmem %s16_s10, 128  ;;  %p139_p4 = scmp.lt.s32.totalorder %s16_s10, %s16_s10 }
   0x9   :  { %p135_p3 = scmp.ne.s32.totalorder %s16_s10, %s134_s18  ;;  %p140_p5 = scmp.lt.s32.totalorder %s134_s18, %s134_s18 }
   0xb   :  { %p141_p6 = por %p140_p5, %p139_p4 }
   0xd   :  { %p142_p7 = pnand %p141_p6, %p135_p3 }
   0xf   :  { %145 = shalt.err (!%p142_p7)
}
  0x10   :  { %18 = dma.hbm_to_vmem [thread:$0]  %s218_s0, 128, %s16_s10, [#allocation3]  }
  0x11   :  { %168 = dma.done.wait [#allocation3], 128  }
  0x12   :  { %169 = vsyncadd [#allocation3], 4294967168  ;;  %v173_v0 = vmov 0.0   ;;  %vm174_vm0 = vmmov 0   ;;  %v25_v1 = vld [vmem:[#allocation2] sm:$0xff]  ;;  %s175_s23 = smov [#allocation5]  }
  0x13   :  { %115 = vmatprep.subr.mxu0 %v173_v0  ;;  %117 = vmatprep.mubr.msk.f32.mxu0 %vm174_vm0, %v173_v0  ;;  %v24_v2 = vld [vmem:[%s219_s1] sm:$0x1]  ;;  %s104_s24 = sshll.u32 %s175_s23, 4  ;;  %vm96_vm1 = vcmask 57344   ;;  %s105_s24 = int_to_ptr.vmem [resolvable:$true] %s104_s24 }
  0x14   :  { %116 = vmatpush3.xpose.msra.mxu0 %v25_v1  ;;  %s146_s0 = scalar_lea.vmem %s105_s24, 16  ;;  %s150_s25 = scalar_lea.vmem %s105_s24, 32 }
  0x15   :  { %p147_p8 = scmp.ne.s32.totalorder %s105_s24, %s146_s0  ;;  %p151_p9 = scmp.lt.s32.totalorder %s105_s24, %s105_s24 }
  0x16   :  { %p152_p10 = scmp.lt.s32.totalorder %s150_s25, %s146_s0 }
  0x17   :  { %118 = vmatmul.mubr.f32.vlgmr.msra.gmra.mrb[0].mxu0 %v24_v2 }
  0x18   :  { %p153_p11 = por %p152_p10, %p151_p9 }
  0x1a   :  { %p154_p12 = pnand %p153_p11, %p147_p8 }
  0xea   :  { %v92_v3 = vpop.f32.mrb[0].mxu0 }
  0xeb   :  { %v119_v4 = vpop.f32.mrb[1].mxu0  ;;  %97 = vst.msk [vmem:[#allocation5] sm:$0x1] %vm96_vm1, %v92_v3 }
  0xec   :  { %157 = shalt.err (!%p154_p12)
}
  0xed   :  { %s158_s1 = scalar_lea.hbm %s220_s2, 16 }
  0xee   :  { %p159_p13 = scmp.ne.s32.totalorder %s220_s2, %s158_s1  ;;  %p162_p0 = scmp.lt.u32.totalorder %s158_s1, %s220_s2 }
  0xf0   :  { %p164_p1 = pnand %p162_p0, %p159_p13 }
  0xf2   :  { %167 = shalt.err (!%p164_p1)
}
  0xf3   :  { %107 = dma.vmem_to_hbm [thread:$0]  %s105_s24, 16, %s220_s2, [#allocation4]  }
  0xf4   :  { %170 = dma.done.wait [#allocation4], 16  }
  0xf5   :  { %171 = vsyncadd [#allocation4], 4294967280 }
  0xf6   :  { %111 = vsyncpa [#allocation3], 1 }
  0xf7   :  { %112 = vsyncpa [#allocation4], 1 }

</bundles_post_ra>
